<compile_context>
chip_gen: v7x
topology: tpu7x:2x2x1
jax: 0.10.0
libtpu: 0.0.40
codegen_flags: <defaults>
</compile_context>

<pallas_src>
import functools
import math

import jax
import jax.numpy as jnp
from jax.experimental import pallas as pl
from jax.experimental.pallas import tpu as pltpu


def _critic_kernel(x_ref, wcat_ref, rows_ref, scal_ref, out_ref, *, d, dp, prec):
    x = x_ref[...]                                                     # (TB, d) f32

    # One fused MXU matmul: x @ [W_psd1|pad | W_psd2|pad | W3a_t|pad | w1 w2 |pad]
    fused = jnp.dot(x, wcat_ref[...],
                    preferred_element_type=jnp.float32,
                    precision=prec)                                    # (TB, Npad)

    # All slices below start on a 128-lane boundary (dp is a multiple of 128).
    xW1 = fused[:, 0:d]                                                # x @ W_psd1
    xW2 = fused[:, dp:dp + d]                                          # x @ W_psd2
    z = fused[:, 2 * dp:2 * dp + d] + rows_ref[0:1, :]                 # x @ W3a^T + b3a
    lin12 = fused[:, 3 * dp:3 * dp + 2]                                # [x@w1, x@w2]

    # Quadratic forms on VPU (multiply) + XLU (lane reduce); MXU already done.
    q1 = jnp.sum(xW1 * x, axis=-1, keepdims=True)                      # (TB, 1)
    q2 = jnp.sum(xW2 * x, axis=-1, keepdims=True)                      # (TB, 1)

    # Scalar params from SMEM: [b1, b2, b3b].
    b1 = scal_ref[0]
    b2 = scal_ref[1]
    b3b = scal_ref[2]

    h1 = -0.5 * q1 + b1 + lin12[:, 0:1]                                # (TB, 1)
    h2 = -0.5 * q2 + b2 + lin12[:, 1:2]                                # (TB, 1)

    # torch.nn.Softplus(beta=1, threshold=20), numerically stable single pass.
    sp = jnp.where(z > 20.0,
                   z,
                   jnp.maximum(z, 0.0) + jnp.log1p(jnp.exp(-jnp.abs(z))))
    y = jnp.sum(sp * rows_ref[1:2, :], axis=-1, keepdims=True) + b3b   # sp @ w3b + b3b
    h3 = -150.0 - jnp.maximum(y, 0.0)                                  # (TB, 1)

    out_ref[...] = jnp.concatenate([h1, h2, h3], axis=-1)              # (TB, 3)


def _resident_spec(shape):
    """Grid-invariant block: constant index_map, single-buffered when supported."""
    index_map = lambda i: (0,) * len(shape)
    try:
        return pl.BlockSpec(shape, index_map, pipeline_mode=pl.Buffered(1))
    except (AttributeError, TypeError):
        return pl.BlockSpec(shape, index_map)


def prepare_critic_params(params):
    """Build the fused kernel operands ONCE (hoisted out of the per-call path)."""
    D = params["W_psd1"].shape[0]
    Dp = ((D + 127) // 128) * 128          # per-block lane stride (128-aligned)
    Npad = 3 * Dp + 128                    # 3 aligned DxD blocks + 1 block for w1,w2

    wcat = jnp.zeros((D, Npad), dtype=jnp.float32)
    wcat = wcat.at[:, 0:D].set(params["W_psd1"].astype(jnp.float32))
    wcat = wcat.at[:, Dp:Dp + D].set(params["W_psd2"].astype(jnp.float32))
    wcat = wcat.at[:, 2 * Dp:2 * Dp + D].set(params["W3a_t"].astype(jnp.float32))
    wcat = wcat.at[:, 3 * Dp:3 * Dp + 1].set(params["w1"].reshape(D, 1).astype(jnp.float32))
    wcat = wcat.at[:, 3 * Dp + 1:3 * Dp + 2].set(params["w2"].reshape(D, 1).astype(jnp.float32))

    rows = jnp.concatenate(
        [params["b3a"].reshape(1, D), params["w3b"].reshape(1, D)],
        axis=0).astype(jnp.float32)                                    # (2, D)

    scalars = jnp.concatenate(
        [params["b1"].reshape(1), params["b2"].reshape(1),
         params["b3b"].reshape(1)]).astype(jnp.float32)                # (3,) -> SMEM

    return {"wcat": wcat, "rows": rows, "scalars": scalars,
            "D": D, "Dp": Dp, "Npad": Npad}


def critic_forward(x, prep, *, tb=None, precision=jax.lax.Precision.HIGHEST):
    """x: (B, D) float32 -> (B, 3) float32 (prep = prepare_critic_params(...))."""
    B, D = x.shape
    assert D == prep["D"], "x feature dim does not match prepared params"
    Dp, Npad = prep["Dp"], prep["Npad"]

    # Per-row VMEM: double-buffered x tile + fused matmul result + double-buffered
    # (lane-padded) output tile.
    bytes_per_row = 4 * (2 * D + Npad + 2 * 128)
    if tb is None:
        tile_budget = 16 << 20                                   # fits v5e/v6e/v7x
        tb_cap = max(8, min(4096, ((tile_budget // bytes_per_row) // 8) * 8))
        # Aim for >= 4 grid steps at large B so v7x can shard across both TCs.
        tb_target = 8 * pl.cdiv(pl.cdiv(B, 4), 8)
        tb = max(8, min(tb_cap, tb_target))

    grid = (pl.cdiv(B, tb),)   # no wrapper-side padding; ragged tail handled by Pallas

    weight_bytes = 4 * (D * Npad + 2 * D)
    vmem_limit = int(min(2 * weight_bytes + tb * bytes_per_row + (4 << 20),
                         100 << 20))

    kernel = functools.partial(_critic_kernel, d=D, dp=Dp, prec=precision)

    out = pl.pallas_call(
        kernel,
        out_shape=jax.ShapeDtypeStruct((B, 3), jnp.float32),
        grid_spec=pltpu.PrefetchScalarGridSpec(
            num_scalar_prefetch=0,
            grid=grid,
            in_specs=[
                pl.BlockSpec((tb, D), lambda i: (i, 0)),            # x tile (pipelined)
                _resident_spec((D, Npad)),                          # fused weights
                _resident_spec((2, D)),                             # [b3a; w3b]
                pl.BlockSpec(memory_space=pltpu.MemorySpace.SMEM),  # [b1, b2, b3b]
            ],
            out_specs=pl.BlockSpec((tb, 3), lambda i: (i, 0)),
        ),
        compiler_params=pltpu.CompilerParams(
            dimension_semantics=("parallel",),
            vmem_limit_bytes=vmem_limit),
    )(x, prep["wcat"], prep["rows"], prep["scalars"])
    return out


def _make_params(dim_input, key):
    """Deterministic parameter construction mirroring Critic.__init__ shapes."""
    D = dim_input
    k1, k2, k3a, k3ab, k3b, k3bb = jax.random.split(key, 6)
    bound = 1.0 / math.sqrt(D)
    uni = lambda k, shape: jax.random.uniform(
        k, shape, dtype=jnp.float32, minval=-bound, maxval=bound)
    return {
        # layer1 / layer2 weights, stored transposed: (D, 1)
        "w1": uni(k1, (D, 1)),
        "w2": uni(k2, (D, 1)),
        # layer3: Linear(D, D) weight^T, bias; Linear(D, 1) weight^T, bias
        "W3a_t": uni(k3a, (D, D)),
        "b3a": uni(k3ab, (1, D)),
        "w3b": uni(k3b, (D, 1)),
        "b3b": uni(k3bb, (1, 1)),
        # PSD matrices initialized to identity (torch.nn.init.eye_)
        "W_psd1": jnp.eye(D, dtype=jnp.float32),
        "W_psd2": jnp.eye(D, dtype=jnp.float32),
        # b1, b2 initialized to -120 (torch.nn.init.constant_)
        "b1": jnp.full((1, 1), -120.0, dtype=jnp.float32),
        "b2": jnp.full((1, 1), -120.0, dtype=jnp.float32),
    }


def _reference(x, p):
    """Pure-JAX reference of the PyTorch forward for verification."""
    P = jax.lax.Precision.HIGHEST
    dot = lambda a, b: jnp.dot(a, b, precision=P)
    q1 = jnp.sum(dot(x, p["W_psd1"]) * x, axis=-1, keepdims=True)
    q2 = jnp.sum(dot(x, p["W_psd2"]) * x, axis=-1, keepdims=True)
    h1 = -0.5 * q1 + p["b1"] + dot(x, p["w1"])
    h2 = -0.5 * q2 + p["b2"] + dot(x, p["w2"])
    z = dot(x, p["W3a_t"]) + p["b3a"]
    sp = jnp.where(z > 20.0,
                   z,
                   jnp.maximum(z, 0.0) + jnp.log1p(jnp.exp(-jnp.abs(z))))
    h3 = -150.0 - jnp.maximum(dot(sp, p["w3b"]) + p["b3b"], 0.0)
    return jnp.concatenate([h1, h2, h3], axis=-1)


if __name__ == "__main__":
    B, D = 8, 32
    key = jax.random.PRNGKey(0)
    kx, kp = jax.random.split(key)
    x = jax.random.normal(kx, (B, D), dtype=jnp.float32)
    params = _make_params(D, kp)
    prep = prepare_critic_params(params)   # built once, reused across forwards

    out = critic_forward(x, prep)
    out = jax.block_until_ready(out)

    ref = _reference(x, params)
    assert out.shape == (B, 3)
    assert jnp.allclose(out, ref, atol=1e-4, rtol=1e-4), (out, ref)
    print("KERNEL_OK")
</pallas_src>

<mosaic_0001>
module attributes {stable_mosaic.version = 11 : i64} {
  func.func @_critic_kernel(%arg0: i32, %arg1: memref<8x32xf32, #tpu.memory_space<vmem>>, %arg2: memref<32x512xf32, #tpu.memory_space<vmem>>, %arg3: memref<2x32xf32, #tpu.memory_space<vmem>>, %arg4: memref<3xf32, #tpu.memory_space<smem>>, %arg5: memref<8x3xf32, #tpu.memory_space<vmem>>) attributes {dimension_semantics = [#tpu.dimension_semantics<parallel>], iteration_bounds = array<i64: 1>, scalar_prefetch = 0 : i64, scratch_operands = 0 : i64, tpu.core_type = #tpu.core_type<tc>, window_params = [{transform_indices = @transform_0, window_bounds = array<i64: 8, 32>}, {pipeline_mode = #tpu.pipeline_mode<synchronous>, transform_indices = @transform_1, window_bounds = array<i64: 32, 512>}, {pipeline_mode = #tpu.pipeline_mode<synchronous>, transform_indices = @transform_2, window_bounds = array<i64: 2, 32>}, {transform_indices = @transform_3, window_bounds = array<i64: 3>}, {transform_indices = @transform_4, window_bounds = array<i64: 8, 3>}]} {
    %c0 = arith.constant 0 : index
    %c0_0 = arith.constant 0 : index
    %0 = vector.load %arg1[%c0, %c0_0] : memref<8x32xf32, #tpu.memory_space<vmem>>, vector<8x32xf32>
    %c0_1 = arith.constant 0 : index
    %c0_2 = arith.constant 0 : index
    %1 = vector.load %arg2[%c0_1, %c0_2] : memref<32x512xf32, #tpu.memory_space<vmem>>, vector<32x512xf32>
    %cst = arith.constant dense<0.000000e+00> : vector<8x512xf32>
    %2 = tpu.matmul %0, %1, %cst {dimension_numbers = #tpu.dot_dimension_numbers<[1], [0], [0], [1], [0, 0, 1, 1], [], []>, precision = #tpu.contract_precision<fp32>} : vector<8x32xf32>, vector<32x512xf32>, vector<8x512xf32> -> vector<8x512xf32>
    %3 = vector.extract_strided_slice %2 {offsets = [0, 0], sizes = [8, 32], strides = [1, 1]} : vector<8x512xf32> to vector<8x32xf32>
    %4 = vector.extract_strided_slice %2 {offsets = [0, 128], sizes = [8, 32], strides = [1, 1]} : vector<8x512xf32> to vector<8x32xf32>
    %5 = vector.extract_strided_slice %2 {offsets = [0, 256], sizes = [8, 32], strides = [1, 1]} : vector<8x512xf32> to vector<8x32xf32>
    %c0_3 = arith.constant 0 : index
    %c0_4 = arith.constant 0 : index
    %6 = vector.load %arg3[%c0_3, %c0_4] : memref<2x32xf32, #tpu.memory_space<vmem>>, vector<1x32xf32>
    %7 = vector.broadcast %6 : vector<1x32xf32> to vector<8x32xf32>
    %8 = arith.addf %5, %7 : vector<8x32xf32>
    %9 = vector.extract_strided_slice %2 {offsets = [0, 384], sizes = [8, 2], strides = [1, 1]} : vector<8x512xf32> to vector<8x2xf32>
    %10 = arith.mulf %3, %0 : vector<8x32xf32>
    %cst_5 = arith.constant dense<0.000000e+00> : vector<8xf32>
    %11 = vector.multi_reduction <add>, %10, %cst_5 [1] : vector<8x32xf32> to vector<8xf32>
    %12 = vector.shape_cast %11 : vector<8xf32> to vector<8x1xf32>
    %13 = arith.mulf %4, %0 : vector<8x32xf32>
    %cst_6 = arith.constant dense<0.000000e+00> : vector<8xf32>
    %14 = vector.multi_reduction <add>, %13, %cst_6 [1] : vector<8x32xf32> to vector<8xf32>
    %15 = vector.shape_cast %14 : vector<8xf32> to vector<8x1xf32>
    %c0_7 = arith.constant 0 : index
    %16 = memref.load %arg4[%c0_7] : memref<3xf32, #tpu.memory_space<smem>>
    %c1 = arith.constant 1 : index
    %17 = memref.load %arg4[%c1] : memref<3xf32, #tpu.memory_space<smem>>
    %c2 = arith.constant 2 : index
    %18 = memref.load %arg4[%c2] : memref<3xf32, #tpu.memory_space<smem>>
    %cst_8 = arith.constant -5.000000e-01 : f32
    %19 = vector.broadcast %cst_8 : f32 to vector<8x1xf32>
    %20 = arith.mulf %19, %12 : vector<8x1xf32>
    %21 = vector.broadcast %16 : f32 to vector<8x1xf32>
    %22 = arith.addf %20, %21 : vector<8x1xf32>
    %23 = vector.extract_strided_slice %9 {offsets = [0, 0], sizes = [8, 1], strides = [1, 1]} : vector<8x2xf32> to vector<8x1xf32>
    %24 = arith.addf %22, %23 : vector<8x1xf32>
    %cst_9 = arith.constant -5.000000e-01 : f32
    %25 = vector.broadcast %cst_9 : f32 to vector<8x1xf32>
    %26 = arith.mulf %25, %15 : vector<8x1xf32>
    %27 = vector.broadcast %17 : f32 to vector<8x1xf32>
    %28 = arith.addf %26, %27 : vector<8x1xf32>
    %29 = vector.extract_strided_slice %9 {offsets = [0, 1], sizes = [8, 1], strides = [1, 1]} : vector<8x2xf32> to vector<8x1xf32>
    %30 = arith.addf %28, %29 : vector<8x1xf32>
    %cst_10 = arith.constant 2.000000e+01 : f32
    %31 = vector.broadcast %cst_10 : f32 to vector<8x32xf32>
    %32 = arith.cmpf ogt, %8, %31 : vector<8x32xf32>
    %cst_11 = arith.constant 0.000000e+00 : f32
    %33 = vector.broadcast %cst_11 : f32 to vector<8x32xf32>
    %34 = arith.maximumf %8, %33 : vector<8x32xf32>
    %35 = math.absf %8 : vector<8x32xf32>
    %cst_12 = arith.constant 0.000000e+00 : f32
    %36 = vector.broadcast %cst_12 : f32 to vector<8x32xf32>
    %37 = arith.subf %36, %35 : vector<8x32xf32>
    %38 = math.exp %37 : vector<8x32xf32>
    %39 = math.log1p %38 : vector<8x32xf32>
    %40 = arith.addf %34, %39 : vector<8x32xf32>
    %41 = arith.select %32, %8, %40 : vector<8x32xi1>, vector<8x32xf32>
    %c1_13 = arith.constant 1 : index
    %c0_14 = arith.constant 0 : index
    %42 = vector.load %arg3[%c1_13, %c0_14] : memref<2x32xf32, #tpu.memory_space<vmem>>, vector<1x32xf32>
    %43 = vector.broadcast %42 : vector<1x32xf32> to vector<8x32xf32>
    %44 = arith.mulf %41, %43 : vector<8x32xf32>
    %cst_15 = arith.constant dense<0.000000e+00> : vector<8xf32>
    %45 = vector.multi_reduction <add>, %44, %cst_15 [1] : vector<8x32xf32> to vector<8xf32>
    %46 = vector.shape_cast %45 : vector<8xf32> to vector<8x1xf32>
    %47 = vector.broadcast %18 : f32 to vector<8x1xf32>
    %48 = arith.addf %46, %47 : vector<8x1xf32>
    %cst_16 = arith.constant 0.000000e+00 : f32
    %49 = vector.broadcast %cst_16 : f32 to vector<8x1xf32>
    %50 = arith.maximumf %48, %49 : vector<8x1xf32>
    %cst_17 = arith.constant -1.500000e+02 : f32
    %51 = vector.broadcast %cst_17 : f32 to vector<8x1xf32>
    %52 = arith.subf %51, %50 : vector<8x1xf32>
    %53 = tpu.concatenate %24, %30, %52 in 1 : vector<8x1xf32>, vector<8x1xf32>, vector<8x1xf32> -> vector<8x3xf32>
    %c0_18 = arith.constant 0 : index
    %c0_19 = arith.constant 0 : index
    %54 = vector.load %arg5[%c0_18, %c0_19] : memref<8x3xf32, #tpu.memory_space<vmem>>, vector<8x3xf32>
    tpu.vector_store %arg5[%c0_18, %c0_19], %53 {strides = array<i32>} : memref<8x3xf32, #tpu.memory_space<vmem>>, vector<8x3xf32>,
    return
  }
  func.func @transform_0(%arg0: i32) -> (i32, i32) {
    %c0_i32 = arith.constant 0 : i32
    %c0_i32_0 = arith.constant 0 : i32
    return %arg0, %c0_i32 : i32, i32
  }
  func.func @transform_1(%arg0: i32) -> (i32, i32) {
    %c0_i32 = arith.constant 0 : i32
    %c0_i32_0 = arith.constant 0 : i32
    %c0_i32_1 = arith.constant 0 : i32
    return %c0_i32, %c0_i32_0 : i32, i32
  }
  func.func @transform_2(%arg0: i32) -> (i32, i32) {
    %c0_i32 = arith.constant 0 : i32
    %c0_i32_0 = arith.constant 0 : i32
    %c0_i32_1 = arith.constant 0 : i32
    return %c0_i32, %c0_i32_0 : i32, i32
  }
  func.func @transform_3(%arg0: i32) -> i32 {
    %c0_i32 = arith.constant 0 : i32
    %c0_i32_0 = arith.constant 0 : i32
    return %c0_i32 : i32
  }
  func.func @transform_4(%arg0: i32) -> (i32, i32) {
    %c0_i32 = arith.constant 0 : i32
    %c0_i32_0 = arith.constant 0 : i32
    return %arg0, %c0_i32 : i32, i32
  }
}

</mosaic_0001>

<bundles_post_ra>
// kernel: tpu_custom_call.1
= control target key start
LH: loop header
LB: loop body
LE: loop exit
PB: predicated region body
PF: predicated region fallthrough
CT: control target
= control target key end

     0   :  { %9 = vsyncpa [#allocation3], 0  ;;  %s1718_s0 = inlined_call_operand.hbm [shape: f32[8,32], index: 0, kind: input, shape index: {}]   ;;  %s1719_s1 = inlined_call_operand.hbm [shape: f32[32,512], index: 1, kind: input, shape index: {}]   ;;  %s1720_s2 = inlined_call_operand.vmem [shape: f32[2,32], index: 2, kind: input, shape index: {}]   ;;  %s1721_s3 = inlined_call_operand.vmem [shape: f32[3], index: 3, kind: input, shape index: {}]   ;;  %s1722_s4 = inlined_call_operand.vmem [shape: f32[8,3], index: 4, kind: output, shape index: {}]  }
   0x1   :  { %10 = vsyncpa [#allocation6], 0 }
   0x2   :  { %11 = vsyncpa [#allocation4], 0  ;;  %s1423_s15 = smov [#allocation2]   ;;  %s1424_s17 = smov [#allocation5]  }
   0x3   :  { %s18_s16 = sshll.u32 %s1423_s15, 4  ;;  %s27_s18 = sshll.u32 %s1424_s17, 4  ;;  %s19_s16 = int_to_ptr.vmem [resolvable:$true] %s18_s16  ;;  %s1454_s18 = int_to_ptr.vmem [resolvable:$true] %s27_s18 }
   0x4   :  { %s1361_s21 = scalar_lea.hbm %s1718_s0, 128 }
   0x5   :  { %p1362_p0 = scmp.ne.s32.totalorder %s1718_s0, %s1361_s21  ;;  %p1365_p1 = scmp.lt.u32.totalorder %s1361_s21, %s1718_s0 }
   0x7   :  { %p1367_p2 = pnand %p1365_p1, %p1362_p0 }
   0x9   :  { %1370 = shalt.err (!%p1367_p2)
}
   0xa   :  { %s1371_s26 = scalar_lea.vmem %s19_s16, 128  ;;  %p1376_p4 = scmp.lt.s32.totalorder %s19_s16, %s19_s16 }
   0xb   :  { %p1372_p3 = scmp.ne.s32.totalorder %s19_s16, %s1371_s26  ;;  %p1377_p5 = scmp.lt.s32.totalorder %s1371_s26, %s1371_s26 }
   0xd   :  { %p1378_p6 = por %p1377_p5, %p1376_p4 }
   0xf   :  { %p1379_p7 = pnand %p1378_p6, %p1372_p3 }
  0x11   :  { %1382 = shalt.err (!%p1379_p7)
}
  0x12   :  { %21 = dma.hbm_to_vmem [thread:$0]  %s1718_s0, 128, %s19_s16, [#allocation3]  }
  0x13   :  { %s1383_s5 = scalar_lea.hbm %s1719_s1, 2048 }
  0x14   :  { %p1384_p8 = scmp.ne.s32.totalorder %s1719_s1, %s1383_s5  ;;  %p1387_p9 = scmp.lt.u32.totalorder %s1383_s5, %s1719_s1 }
  0x16   :  { %p1389_p10 = pnand %p1387_p9, %p1384_p8 }
  0x18   :  { %1392 = shalt.err (!%p1389_p10)
}
  0x19   :  { %s1393_s10 = scalar_lea.vmem %s1454_s18, 2048  ;;  %p1398_p12 = scmp.lt.s32.totalorder %s1454_s18, %s1454_s18 }
  0x1a   :  { %p1394_p11 = scmp.ne.s32.totalorder %s1454_s18, %s1393_s10  ;;  %p1399_p13 = scmp.lt.s32.totalorder %s1393_s10, %s1393_s10 }
  0x1c   :  { %p1400_p0 = por %p1399_p13, %p1398_p12 }
  0x1e   :  { %p1401_p1 = pnand %p1400_p0, %p1394_p11 }
  0x20   :  { %1404 = shalt.err (!%p1401_p1)
}
  0x21   :  { %s1425_s0 = smov 512   ;;  %s1426_s11 = smov 32  }
  0x22   :  { %33 = dma.hbm_to_vmem [thread:$0]  %s1719_s1, 2048, %s1454_s18, [#allocation6], %s1425_s0, %s1425_s0, %s1426_s11  }
  0x23   :  { %s42_s16 = sshll.u32 %s1721_s3, 4  ;;  %s43_s16 = int_to_ptr.vmem [resolvable:$true] %s42_s16 }
  0x24   :  { %s1405_s17 = scalar_lea.vmem %s43_s16, 16  ;;  %p1410_p3 = scmp.lt.s32.totalorder %s43_s16, %s43_s16 }
  0x25   :  { %p1406_p2 = scmp.ne.s32.totalorder %s43_s16, %s1405_s17  ;;  %p1411_p4 = scmp.lt.s32.totalorder %s1405_s17, %s1405_s17 }
  0x27   :  { %p1412_p5 = por %p1411_p4, %p1410_p3 }
  0x29   :  { %p1413_p6 = pnand %p1412_p5, %p1406_p2 }
  0x2b   :  { %1416 = shalt.err (!%p1413_p6)
}
  0x2c   :  { %s1427_s19 = smov [#allocation7]  }
  0x2d   :  { %45 = dma.vmem_to_smem %s43_s16, 16, %s1427_s19, [#allocation4]  }
  0x2e   :  { %1417 = dma.done.wait [#allocation3], 128  }
  0x2f   :  { %1418 = vsyncadd [#allocation3], 4294967168 }
  0x30   :  { %1419 = dma.done.wait [#allocation6], 2048  }
  0x31   :  { %1420 = vsyncadd [#allocation6], 4294965248 }
  0x32   :  { %1421 = dma.done.wait [#allocation4], 16  }
  0x33   :  { %1422 = vsyncadd [#allocation4], 4294967280 }
  0x34   :  { %55 = sfence }
  0x35   :  { %v58_v0 = vld [vmem:[#allocation5 + $0x8] sm:$0xff]  ;;  %v60_v2 = vld [vmem:[#allocation5 + $0x18] sm:$0xff]  ;;  %vm73_vm0 = vcmask 261120   ;;  %v57_v7 = vld [vmem:[#allocation5] sm:$0xff]  ;;  %v1428_v9 = vmov 0.0   ;;  %s1232_s21 = sld [smem:[#allocation7 + $0x1]] }
  0x36   :  { %v62_v1 = vld [vmem:[#allocation5 + $0x28] sm:$0xff]  ;;  %v77_v3 = vand.u32 4294901760, %v58_v0  ;;  %v64_v5 = vld [vmem:[#allocation5 + $0x38] sm:$0xff]  ;;  %v620_v6 = vand.u32 4294901760, %v60_v2  ;;  %v61_v8 = vld [vmem:[#allocation5 + $0x20] sm:$0xff]  ;;  %149 = vmatprep.mubr.f32.mxu0 %v1428_v9  ;;  %692 = vmatprep.mubr.f32.mxu1 %v1428_v9  ;;  %v79_v11 = vand.u32 4294901760, %v57_v7 }
  0x37   :  { %v81_v4 = vand.u32 4294901760, %v62_v1  ;;  %v624_v10 = vand.u32 4294901760, %v64_v5  ;;  %v83_v12 = vand.u32 4294901760, %v61_v8  ;;  %v59_v13 = vld [vmem:[#allocation5 + $0x10] sm:$0xff]  ;;  %v66_v15 = vld [vmem:[#allocation5 + $0x48] sm:$0xff]  ;;  %v68_v21 = vld [vmem:[#allocation5 + $0x58] sm:$0xff] }
  0x38   :  { %v63_v14 = vld [vmem:[#allocation5 + $0x30] sm:$0xff]  ;;  %v1492_v17 = vsub.f32 %v58_v0, %v77_v3  ;;  %v1496_v19 = vsub.f32 %v60_v2, %v620_v6  ;;  %v70_v20 = vld [vmem:[#allocation5 + $0x68] sm:$0xff]  ;;  %v72_v22 = vld [vmem:[#allocation5 + $0x78] sm:$0xff]  ;;  %v1504_v26 = vsub.f32 %v57_v7, %v79_v11  ;;  %v622_v29 = vand.u32 4294901760, %v59_v13  ;;  %s1177_s22 = sld [smem:[#allocation7]]  ;;  %s1233_s23 = sld [smem:[#allocation7 + $0x2]] }
  0x39   :  { %v1490_v16 = vpack.c.bf16 %v81_v4, %v77_v3  ;;  %v1494_v18 = vsub.f32 %v62_v1, %v81_v4  ;;  %v1498_v23 = vpack.c.bf16 %v624_v10, %v620_v6  ;;  %v1500_v24 = vsub.f32 %v64_v5, %v624_v10  ;;  %v65_v27 = vld [vmem:[#allocation5 + $0x40] sm:$0xff]  ;;  %v67_v37 = vld [vmem:[#allocation5 + $0x50] sm:$0xff]  ;;  %v1519_v43 = vld [vmem:[#allocation2] sm:$0xff] }
  0x3a   :  { %v1502_v25 = vpack.c.bf16 %v83_v12, %v79_v11  ;;  %v1507_v28 = vsub.f32 %v61_v8, %v83_v12  ;;  %v626_v30 = vand.u32 4294901760, %v63_v14  ;;  %v85_v31 = vand.u32 4294901760, %v66_v15  ;;  %v69_v35 = vld [vmem:[#allocation5 + $0x60] sm:$0xff]  ;;  %v71_v42 = vld [vmem:[#allocation5 + $0x70] sm:$0xff] }
  0x3b   :  { %1236 = vmatprep.subr.bf16.mxu0 %v1490_v16  ;;  %1284 = vmatprep.subr.bf16.mxu1 %v1498_v23  ;;  %v89_v32 = vand.u32 4294901760, %v70_v20  ;;  %v628_v33 = vand.u32 4294901760, %v68_v21  ;;  %v632_v34 = vand.u32 4294901760, %v72_v22  ;;  %v87_v36 = vand.u32 4294901760, %v65_v27 }
  0x3c   :  { %1238 = vmatpush1.bf16.msra.mxu0 %v1502_v25  ;;  %v1511_v38 = vpack.c.bf16 %v626_v30, %v622_v29  ;;  %v1513_v39 = vsub.f32 %v59_v13, %v622_v29  ;;  %v1515_v40 = vsub.f32 %v63_v14, %v626_v30  ;;  %v1517_v41 = vsub.f32 %v66_v15, %v85_v31 }
  0x3d   :  { %v1521_v44 = vpack.c.bf16 %v89_v32, %v85_v31  ;;  %v1523_v45 = vsub.f32 %v70_v20, %v89_v32  ;;  %v1525_v46 = vpack.c.bf16 %v632_v34, %v628_v33  ;;  %v1527_v47 = vsub.f32 %v68_v21, %v628_v33 }
  0x3e   :  { %1286 = vmatpush1.bf16.msra.mxu1 %v1511_v38  ;;  %v1530_v48 = vsub.f32 %v72_v22, %v632_v34  ;;  %v91_v49 = vand.u32 4294901760, %v69_v35  ;;  %v1532_v50 = vsub.f32 %v65_v27, %v87_v36  ;;  %v630_v51 = vand.u32 4294901760, %v67_v37 }
  0x3f   :  { %1240 = vmatprep.subr.bf16.mxu0 %v1521_v44  ;;  %1288 = vmatprep.subr.bf16.mxu1 %v1525_v46  ;;  %v634_v52 = vand.u32 4294901760, %v71_v42  ;;  %v75_v53 = vsel %vm73_vm0, %v1519_v43, 0  ;;  %v163_v54 = vand.u32 4294901760, %v1492_v17  ;;  %v175_v55 = vand.u32 4294901760, %v1494_v18 }
  0x40   :  { %v1540_v56 = vpack.c.bf16 %v91_v49, %v87_v36  ;;  %v1542_v57 = vsub.f32 %v69_v35, %v91_v49  ;;  %v1544_v58 = vsub.f32 %v67_v37, %v630_v51  ;;  %v1546_v59 = vand.u32 4294901760, %v75_v53 }
  0x41   :  { %v1548_v60 = vpack.c.bf16 %v634_v52, %v630_v51  ;;  %v1550_v61 = vsub.f32 %v71_v42, %v634_v52  ;;  %v164_v62 = vsub.f32 %v1492_v17, %v163_v54  ;;  %v176_v63 = vsub.f32 %v1494_v18, %v175_v55 }
  0x42   :  { %1242 = vmatpush1.bf16.msra.mxu0 %v1540_v56  ;;  %v1560_v0 = vsub.f32 %v75_v53, %v1546_v59  ;;  %v706_v1 = vand.u32 4294901760, %v1496_v19  ;;  %v718_v2 = vand.u32 4294901760, %v1500_v24  ;;  %v169_v3 = vand.u32 4294901760, %v1504_v26 }
  0x43   :  { %1290 = vmatpush1.bf16.msra.mxu1 %v1548_v60  ;;  %v165_v4 = vand.u32 4294901760, %v164_v62  ;;  %v177_v5 = vand.u32 4294901760, %v176_v63  ;;  %v181_v6 = vand.u32 4294901760, %v1507_v28  ;;  %v712_v7 = vand.u32 4294901760, %v1513_v39 }
  0x44   :  { %v1569_v8 = vand.u32 4294901760, %v1560_v0  ;;  %v707_v10 = vsub.f32 %v1496_v19, %v706_v1  ;;  %v719_v11 = vsub.f32 %v1500_v24, %v718_v2  ;;  %v170_v12 = vsub.f32 %v1504_v26, %v169_v3 }
  0x45   :  { %v1243_v13 = vpack.c.bf16 %v177_v5, %v165_v4  ;;  %v182_v14 = vsub.f32 %v1507_v28, %v181_v6  ;;  %v713_v15 = vsub.f32 %v1513_v39, %v712_v7  ;;  %v724_v20 = vand.u32 4294901760, %v1515_v40 }
  0x46   :  { %v153_v21 = vsub.f32 %v1560_v0, %v1569_v8  ;;  %v708_v22 = vand.u32 4294901760, %v707_v10  ;;  %v720_v27 = vand.u32 4294901760, %v719_v11  ;;  %v171_v29 = vand.u32 4294901760, %v170_v12 }
  0x47   :  { %1244 = vmatprep.subr.bf16.mxu0 %v1243_v13  ;;  %v183_v30 = vand.u32 4294901760, %v182_v14  ;;  %v714_v31 = vand.u32 4294901760, %v713_v15  ;;  %v725_v32 = vsub.f32 %v1515_v40, %v724_v20  ;;  %v187_v33 = vand.u32 4294901760, %v1517_v41 }
  0x48   :  { %v154_v34 = vand.u32 4294901760, %v153_v21  ;;  %v1291_v35 = vpack.c.bf16 %v720_v27, %v708_v22  ;;  %v199_v36 = vand.u32 4294901760, %v1523_v45  ;;  %v730_v37 = vand.u32 4294901760, %v1527_v47 }
  0x49   :  { %v1245_v42 = vpack.c.bf16 %v183_v30, %v171_v29  ;;  %v726_v49 = vand.u32 4294901760, %v725_v32  ;;  %v188_v51 = vsub.f32 %v1517_v41, %v187_v33  ;;  %v742_v52 = vand.u32 4294901760, %v1530_v48 }
  0x4a   :  { %155 = vmatmul.mubr.f32.vlgmr.msra.gmra.mrb[0].mxu0 %v154_v34  ;;  %698 = vmatmul.mubr.f32.vlgmr.msra.gmra.mrb[0].mxu1 %v154_v34  ;;  %v200_v53 = vsub.f32 %v1523_v45, %v199_v36  ;;  %v731_v62 = vsub.f32 %v1527_v47, %v730_v37  ;;  %v193_v63 = vand.u32 4294901760, %v1532_v50  ;;  %v205_v4 = vand.u32 4294901760, %v1542_v57 }
  0x4b   :  { %1292 = vmatprep.subr.bf16.mxu1 %v1291_v35  ;;  %1246 = vmatpush1.bf16.msra.mxu0 %v1245_v42  ;;  %v1293_v5 = vpack.c.bf16 %v726_v49, %v714_v31  ;;  %v189_v10 = vand.u32 4294901760, %v188_v51  ;;  %v743_v11 = vsub.f32 %v1530_v48, %v742_v52  ;;  %v736_v12 = vand.u32 4294901760, %v1544_v58 }
  0x4c   :  { %v201_v13 = vand.u32 4294901760, %v200_v53  ;;  %v732_v14 = vand.u32 4294901760, %v731_v62  ;;  %v194_v15 = vsub.f32 %v1532_v50, %v193_v63  ;;  %v206_v21 = vsub.f32 %v1542_v57, %v205_v4  ;;  %265 = vmatprep.mubr.f32.mxu0 %v1428_v9  ;;  %808 = vmatprep.mubr.f32.mxu1 %v1428_v9 }
  0x4d   :  { %1294 = vmatpush1.bf16.msra.mxu1 %v1293_v5  ;;  %v744_v22 = vand.u32 4294901760, %v743_v11  ;;  %v737_v27 = vsub.f32 %v1544_v58, %v736_v12  ;;  %v748_v29 = vand.u32 4294901760, %v1550_v61  ;;  %v1251_v49 = vpack.c.bf16 %v1494_v18, %v1492_v17 }
  0x4e   :  { %v1247_v30 = vpack.c.bf16 %v201_v13, %v189_v10  ;;  %v195_v31 = vand.u32 4294901760, %v194_v15  ;;  %v207_v32 = vand.u32 4294901760, %v206_v21  ;;  %v1299_v62 = vpack.c.bf16 %v1500_v24, %v1496_v19 }
  0x4f   :  { %v1295_v34 = vpack.c.bf16 %v744_v22, %v732_v14  ;;  %v738_v35 = vand.u32 4294901760, %v737_v27  ;;  %v749_v42 = vsub.f32 %v1550_v61, %v748_v29  ;;  %v1253_v5 = vpack.c.bf16 %v1507_v28, %v1504_v26 }
  0x50   :  { %1248 = vmatprep.subr.bf16.mxu0 %v1247_v30  ;;  %v1249_v51 = vpack.c.bf16 %v207_v32, %v195_v31  ;;  %v1255_v11 = vpack.c.bf16 %v1523_v45, %v1517_v41  ;;  %v1301_v13 = vpack.c.bf16 %v1515_v40, %v1513_v39  ;;  %v1303_v14 = vpack.c.bf16 %v1530_v48, %v1527_v47 }
  0x51   :  { %1296 = vmatprep.subr.bf16.mxu1 %v1295_v34  ;;  %v750_v53 = vand.u32 4294901760, %v749_v42  ;;  %v1257_v15 = vpack.c.bf16 %v1542_v57, %v1532_v50  ;;  %v1305_v21 = vpack.c.bf16 %v1550_v61, %v1544_v58  ;;  %v1267_v61 = vpack.c.bf16 %v175_v55, %v163_v54 }
  0x52   :  { %1250 = vmatpush1.bf16.msra.mxu0 %v1249_v51  ;;  %v1315_v22 = vpack.c.bf16 %v718_v2, %v706_v1  ;;  %v1269_v17 = vpack.c.bf16 %v181_v6, %v169_v3  ;;  %v1271_v18 = vpack.c.bf16 %v199_v36, %v187_v33  ;;  %v1317_v19 = vpack.c.bf16 %v724_v20, %v712_v7  ;;  %v1234_v2 = vld [vmem:[%s1720_s2 + $0x1] ss:$0 sm:$0xff] }
  0x53   :  { %v1297_v10 = vpack.c.bf16 %v750_v53, %v738_v35  ;;  %1252 = vmatprep.subr.bf16.mxu0 %v1251_v49  ;;  %v1319_v24 = vpack.c.bf16 %v742_v52, %v730_v37  ;;  %v1273_v26 = vpack.c.bf16 %v205_v4, %v193_v63  ;;  %v1321_v28 = vpack.c.bf16 %v748_v29, %v736_v12 }
  0x54   :  { %v1185_v36 = vstv %s1232_s21  ;;  %v1181_v52 = vstv %s1177_s22  ;;  %v1214_v4 = vstv %s1233_s23  ;;  %vm1218_vm3 = vcmask 7168  }
  0x55   :  { %1298 = vmatpush1.bf16.msra.mxu1 %v1297_v10  ;;  %267 = vmatmul.mubr.f32.vlgmr.msra.gmra.mrb[0].mxu0 %v1546_v59  ;;  %vm1220_vm4 = vcmask 15360   ;;  %vm1222_vm5 = vcmask 23552  }
  0x56   :  { %1300 = vmatprep.subr.bf16.mxu1 %v1299_v62  ;;  %1254 = vmatpush1.bf16.msra.mxu0 %v1253_v5 }
  0x57   :  { %1256 = vmatprep.subr.bf16.mxu0 %v1255_v11  ;;  %353 = vmatprep.mubr.f32.mxu0 %v1428_v9 }
  0x58   :  { %810 = vmatmul.mubr.f32.vlgmr.msra.gmra.mrb[0].mxu1 %v1546_v59 }
  0x59   :  { %1302 = vmatpush1.bf16.msra.mxu1 %v1301_v13  ;;  %896 = vmatprep.mubr.f32.mxu1 %v1428_v9 }
  0x5a   :  { %1304 = vmatprep.subr.bf16.mxu1 %v1303_v14  ;;  %1258 = vmatpush1.bf16.msra.mxu0 %v1257_v15 }
  0x5b   :  { %1260 = vmatprep.subr.bf16.mxu0 %v1490_v16 }
  0x5d   :  { %1306 = vmatpush1.bf16.msra.mxu1 %v1305_v21  ;;  %356 = vmatmul.mubr.f32.vlgmr.msra.gmra.mrb[0].mxu0 %v1560_v0 }
  0x5e   :  { %1308 = vmatprep.subr.bf16.mxu1 %v1498_v23  ;;  %1262 = vmatpush1.bf16.msra.mxu0 %v1502_v25 }
  0x5f   :  { %1264 = vmatprep.subr.bf16.mxu0 %v1521_v44  ;;  %434 = vmatprep.mubr.f32.mxu0 %v1428_v9 }
  0x60   :  { %899 = vmatmul.mubr.f32.vlgmr.msra.gmra.mrb[0].mxu1 %v1560_v0 }
  0x61   :  { %1310 = vmatpush1.bf16.msra.mxu1 %v1511_v38  ;;  %977 = vmatprep.mubr.f32.mxu1 %v1428_v9 }
  0x62   :  { %1312 = vmatprep.subr.bf16.mxu1 %v1525_v46  ;;  %1266 = vmatpush1.bf16.msra.mxu0 %v1540_v56 }
  0x63   :  { %1268 = vmatprep.subr.bf16.mxu0 %v1267_v61 }
  0x65   :  { %1314 = vmatpush1.bf16.msra.mxu1 %v1548_v60  ;;  %438 = vmatmul.mubr.f32.vlgmr.msra.gmra.mrb[0].mxu0 %v1569_v8 }
  0x66   :  { %1316 = vmatprep.subr.bf16.mxu1 %v1315_v22  ;;  %1270 = vmatpush1.bf16.msra.mxu0 %v1269_v17 }
  0x67   :  { %1272 = vmatprep.subr.bf16.mxu0 %v1271_v18  ;;  %532 = vmatprep.mubr.f32.mxu0 %v1428_v9 }
  0x68   :  { %981 = vmatmul.mubr.f32.vlgmr.msra.gmra.mrb[0].mxu1 %v1569_v8 }
  0x69   :  { %1318 = vmatpush1.bf16.msra.mxu1 %v1317_v19  ;;  %1075 = vmatprep.mubr.f32.mxu1 %v1428_v9 }
  0x6a   :  { %1320 = vmatprep.subr.bf16.mxu1 %v1319_v24  ;;  %1274 = vmatpush1.bf16.msra.mxu0 %v1273_v26 }
  0x6b   :  { %1276 = vmatprep.subr.bf16.mxu0 %v1490_v16 }
  0x6d   :  { %1322 = vmatpush1.bf16.msra.mxu1 %v1321_v28  ;;  %534 = vmatmul.mubr.f32.vlgmr.msra.gmra.mrb[0].mxu0 %v1546_v59 }
  0x6e   :  { %1324 = vmatprep.subr.bf16.mxu1 %v1498_v23  ;;  %1278 = vmatpush1.bf16.msra.mxu0 %v1502_v25  ;;  %v1231_v25 = vld [vmem:[%s1720_s2] ss:$0 sm:$0xff] }
  0x6f   :  { %1280 = vmatprep.subr.bf16.mxu0 %v1521_v44  ;;  %612 = vmatprep.mubr.f32.mxu0 %v1428_v9 }
  0x70   :  { %1077 = vmatmul.mubr.f32.vlgmr.msra.gmra.mrb[0].mxu1 %v1546_v59 }
  0x71   :  { %1326 = vmatpush1.bf16.msra.mxu1 %v1511_v38  ;;  %1155 = vmatprep.mubr.f32.mxu1 %v1428_v9 }
  0x72   :  { %1328 = vmatprep.subr.bf16.mxu1 %v1525_v46  ;;  %1282 = vmatpush1.bf16.msra.mxu0 %v1540_v56 }
  0x75   :  { %1330 = vmatpush1.bf16.msra.mxu1 %v1548_v60  ;;  %614 = vmatmul.mubr.f32.vlgmr.msra.gmra.mrb[0].mxu0 %v1546_v59 }
  0x78   :  { %1157 = vmatmul.mubr.f32.vlgmr.msra.gmra.mrb[0].mxu1 %v1546_v59 }
 0x148   :  { %v615_v16 = vpop.f32.mrb[0].mxu0 }
 0x149   :  { %v1169_v23 = vmul.f32 %v615_v16, %v1519_v43  ;;  %v617_v38 = vpop.f32.mrb[1].mxu0 }
 0x14a   :  { %v1173_v9 = vmul.f32 %v617_v38, %v1519_v43 }
 0x14b   :  { %v1158_v39 = vpop.f32.mrb[0].mxu1  ;;  %v1170_v40 = vsel %vm73_vm0, %v1169_v23, 0.0 }
 0x14c   :  { %v1168_v41 = vadd.f32 %v1231_v25, %v1158_v39  ;;  %v1160_v44 = vpop.f32.mrb[1].mxu1  ;;  %1171 = vadd.xlane.f32.xlu0 %v1170_v40  ;;  %v1174_v46 = vsel %vm73_vm0, %v1173_v9, 0.0 }
 0x14e   :  { %v1190_v45 = vand.u32 2147483647, %v1168_v41  ;;  %v1189_v60 = vmax.f32 %v1168_v41, 0.0  ;;  %vm1188_vm2 = vcmp.gt.f32.partialorder %v1168_v41, 20.0 }
 0x150   :  { %v1191_v47 = vsub.f32 0.0, %v1190_v45  ;;  %1175 = vadd.xlane.f32.xlu0 %v1174_v46 }
 0x152   :  { %v1192_v48 = vmul.f32 1.442695, %v1191_v47 }
 0x154   :  { %1357 = vpow2.f32 %v1192_v48 }
 0x15e   :  { %v1358_v50 = vpop.eup %1357 }
 0x15f   :  { %v1194_v54 = vadd.f32 1.0, %v1358_v50  ;;  %v1197_v55 = vmul.f32 -0.5, %v1358_v50  ;;  %v1200_v57 = vand.u32 2147483647, %v1358_v50 }
 0x161   :  { %1359 = vlog2.f32 %v1194_v54  ;;  %v1198_v56 = vadd.f32 1.0, %v1197_v55  ;;  %vm1201_vm1 = vcmp.lt.f32.partialorder %v1200_v57, 0.0004427343 }
 0x163   :  { %v1199_v59 = vmul.f32 %v1358_v50, %v1198_v56 }
 0x16b   :  { %v1360_v58 = vpop.eup %1359 }
 0x16c   :  { %v1196_v43 = vmul.f32 0.6931472, %v1360_v58 }
 0x16e   :  { %v1202_v0 = vsel %vm1201_vm1, %v1199_v59, %v1196_v43 }
 0x16f   :  { %v1203_v1 = vadd.f32 %v1202_v0, %v1189_v60 }
 0x171   :  { %v1204_v3 = vsel %vm1188_vm2, %v1168_v41, %v1203_v1 }
 0x172   :  { %v1210_v6 = vmul.f32 %v1234_v2, %v1204_v3 }
 0x174   :  { %v1211_v7 = vsel %vm73_vm0, %v1210_v6, 0.0 }
 0x175   :  { %1212 = vadd.xlane.f32.xlu1 %v1211_v7 }
 0x1d9   :  { %v1172_v8 = vpop.xlane.xlu0 %1171 }
 0x1da   :  { %v1180_v37 = vmul.f32 -0.5, %v1172_v8 }
 0x1dc   :  { %v1182_v12 = vadd.f32 %v1181_v52, %v1180_v37 }
 0x1dd   :  { %v1176_v20 = vpop.xlane.xlu0 %1175 }
 0x1de   :  { %v1184_v33 = vmul.f32 -0.5, %v1176_v20  ;;  %v1183_v32 = vadd.f32 %v1182_v12, %v1160_v44 }
 0x1e0   :  { %v1186_v63 = vadd.f32 %v1185_v36, %v1184_v33 }
 0x1e2   :  { %v1187_v30 = vadd.f32 %v1186_v63, %v1160_v44 }
 0x1e4   :  { %v1219_v35 = vsel %vm1218_vm3, %v1183_v32, %v1187_v30 }
 0x202   :  { %v1213_v27 = vpop.xlane.xlu1 %1212 }
 0x203   :  { %v1215_v29 = vadd.f32 %v1214_v4, %v1213_v27 }
 0x205   :  { %v1216_v31 = vmax.f32 %v1215_v29, 0.0 }
 0x207   :  { %v1217_v34 = vsub.f32 -150.0, %v1216_v31 }
 0x209   :  { %v1221_v42 = vsel %vm1220_vm4, %v1219_v35, %v1217_v34 }
 0x20a   :  { %1223 = vst.msk [vmem:[%s1722_s4] sm:$0xff] %vm1222_vm5, %v1221_v42 }
 0x20b   :  { %1228 = vsyncpa [#allocation3], 1 }
 0x20c   :  { %1229 = vsyncpa [#allocation6], 1 }
 0x20d   :  { %1230 = vsyncpa [#allocation4], 1 }

</bundles_post_ra>
